<compile_context>
chip_gen: v7x
topology: tpu7x:2x2x1
jax: 0.10.0
libtpu: 0.0.40
codegen_flags: <defaults>
</compile_context>

<pallas_src>
import jax
import jax.numpy as jnp
from jax.experimental import pallas as pl
from jax.experimental.pallas import tpu as pltpu


def ppo_critic_kernel(x_ref, w1_ref, bw_ref, b2_ref, o_ref):
    # x_ref:  (TB, n_obs)  VMEM, native dtype (f32 or bf16)
    # w1_ref: (n_obs, H)   VMEM, same dtype as x
    # bw_ref: (2, H)       VMEM f32 -- row 0 = b1, row 1 = value-head weight
    # b2_ref: (1,)         SMEM f32 scalar
    # o_ref:  (1, TB)      VMEM f32 (lane-dense output row)

    # Layer 1 on the MXU, f32 accumulation regardless of input dtype.
    h = jnp.dot(x_ref[...], w1_ref[...], preferred_element_type=jnp.float32)
    h = jnp.maximum(h + bw_ref[0:1, :], 0.0)

    # Layer 2 (H -> 1): VPU multiply + cross-lane reduction (avoids a degenerate
    # N=1 MXU matmul).  Result is a (TB, 1) column; transpose it to a (1, TB)
    # row so the store is lane-dense (XLU is idle here, transpose ~free).
    v_col = jnp.sum(h * bw_ref[1:2, :], axis=-1, keepdims=True) + b2_ref[0]
    o_ref[...] = v_col.T.astype(o_ref.dtype)


# ----------------------------------------------------------------------------
# Host-side sizing helpers (generation-aware, pad-aware)
# ----------------------------------------------------------------------------

_LANE = 128


def _round_up(v, m):
    return ((v + m - 1) // m) * m


def _tpu_vmem_capacity_bytes():
    """Physical VMEM per TensorCore; conservative 64 MiB fallback (v7x)."""
    try:
        cap = int(pltpu.get_tpu_info().vmem_capacity_bytes)
        if cap > 0:
            return cap
    except Exception:
        pass
    return 64 * 1024 * 1024


def _num_tensorcores():
    """2 TensorCores per chip on v7x, 1 on v5e/v6e."""
    try:
        kind = jax.devices()[0].device_kind.lower()
        if "v7" in kind or "7x" in kind:
            return 2
    except Exception:
        pass
    return 1


def _vmem_need_bytes(tile_batch, n_obs, H, x_itemsize, sublane):
    """Pad-aware VMEM footprint estimate: every resident buffer is rounded up to
    its (sublane, 128)-tiled storage size."""
    def rows(r, s):
        return _round_up(max(int(r), 1), s)

    def cols(c):
        return _round_up(max(int(c), 1), _LANE)

    x_tile = 2 * rows(tile_batch, sublane) * cols(n_obs) * x_itemsize   # x (double-buffered)
    w1_res = 2 * rows(n_obs, sublane) * cols(H) * x_itemsize            # W1 (counted double-buffered)
    bw_res = 2 * rows(2, 8) * cols(H) * 4                               # (2,H) f32 b1/w2 pack
    hidden = rows(tile_batch, 8) * cols(H) * 4                          # f32 layer-1 intermediate
    out_t = 2 * rows(1, 8) * cols(tile_batch) * 4                       # (1,TB) f32 output (double-buffered)
    slack = 2 * 1024 * 1024                                             # compiler internal scratch
    return x_tile + w1_res + bw_res + hidden + out_t + slack


def _choose_tile_batch(B, n_obs, H, itemsize, sublane, vmem_budget, num_tensorcores):
    """Pick the batch tile:
       * candidates: B itself plus every sublane-multiple divisor of B,
       * keep only tiles whose pad-aware footprint fits the VMEM budget,
       * single-TC (v5e/v6e): largest fitting tile (grid is a serial loop),
       * 2-TC (v7x): prefer an even tile count (balanced megacore split)."""
    candidates = sorted({B} | {t for t in range(sublane, B, sublane) if B % t == 0})
    fitting = [t for t in candidates
               if _vmem_need_bytes(t, n_obs, H, itemsize, sublane) <= vmem_budget]
    if not fitting:
        # Even the smallest legal tile busts the budget (W1 dominates).
        # TODO(synk): add an n_obs (K) reduction grid axis with an f32 accumulator
        # for very large observation dims on v7x's 64 MiB VMEM.
        return min(candidates)
    if num_tensorcores >= 2:
        balanced = [t for t in fitting if (B // t) % 2 == 0]
        if balanced:
            return max(balanced)
    return max(fitting)


# ----------------------------------------------------------------------------
# Wrapper
# ----------------------------------------------------------------------------

def ppo_critic_forward(x, w1, b1, w2, b2, *, tile_batch=None, compute_dtype=None):
    """x: (B, n_obs); w1: (n_obs, H); b1: (H,); w2: (H, 1); b2: (1,).

    compute_dtype: opt-in cast of x / w1 (e.g. jnp.bfloat16).  Only worthwhile
    when x is already low precision upstream (or the cast fuses into x's
    producer) -- a standalone cast of a single-use activation adds an extra
    HBM pass.  Accumulation is always f32.
    """
    B, n_obs = x.shape
    H = w1.shape[1]

    if compute_dtype is not None:
        x = x.astype(compute_dtype)
        w1 = w1.astype(compute_dtype)

    itemsize = jnp.dtype(x.dtype).itemsize
    sublane = max(8, 32 // itemsize)        # 8 for f32, 16 for bf16

    vmem_cap = _tpu_vmem_capacity_bytes()
    vmem_budget = int(0.80 * vmem_cap)      # headroom for pipeline/internal scratch
    num_tc = _num_tensorcores()

    if tile_batch is None:
        tile_batch = _choose_tile_batch(B, n_obs, H, itemsize, sublane,
                                        vmem_budget, num_tc)
    assert B % tile_batch == 0, "tile_batch must divide the batch"
    assert tile_batch == B or tile_batch % sublane == 0, (
        "tile_batch must be a multiple of the sublane packing when tiling")
    num_tiles = B // tile_batch

    # Pack b1 (row 0) and the value-head weight (row 1) into one f32 operand.
    bw = jnp.concatenate(
        [b1.reshape(1, H), w2.reshape(1, H)], axis=0).astype(jnp.float32)
    b2_1d = b2.reshape(1).astype(jnp.float32)

    need = _vmem_need_bytes(tile_batch, n_obs, H, itemsize, sublane)
    vmem_limit = int(min(max(need, 16 * 1024 * 1024), int(0.85 * vmem_cap)))

    out = pl.pallas_call(
        ppo_critic_kernel,
        out_shape=jax.ShapeDtypeStruct((num_tiles, 1, tile_batch), jnp.float32),
        grid_spec=pltpu.PrefetchScalarGridSpec(
            num_scalar_prefetch=0,
            grid=(num_tiles,),
            in_specs=[
                pl.BlockSpec((tile_batch, n_obs), lambda i: (i, 0)),    # x tile
                pl.BlockSpec((n_obs, H), lambda i: (0, 0)),             # W1 (grid-invariant)
                pl.BlockSpec((2, H), lambda i: (0, 0)),                 # b1 / w2 pack
                pl.BlockSpec(memory_space=pltpu.MemorySpace.SMEM),      # b2 scalar
            ],
            out_specs=pl.BlockSpec((None, 1, tile_batch), lambda i: (i, 0, 0)),
        ),
        compiler_params=pltpu.CompilerParams(
            dimension_semantics=("parallel",),
            vmem_limit_bytes=vmem_limit,
        ),
    )(x, w1, bw, b2_1d)

    # (num_tiles, 1, TB) row-major flatten is exactly batch order.
    return out.reshape(B, 1)


def init_params(key, n_obs, hidden_units):
    """Deterministic init mimicking nn.Linear default (uniform(-1/sqrt(fan_in)))."""
    k1, k2, k3, k4 = jax.random.split(key, 4)
    bound1 = 1.0 / jnp.sqrt(jnp.float32(n_obs))
    bound2 = 1.0 / jnp.sqrt(jnp.float32(hidden_units))
    # stored pre-transposed: (in, out)
    w1 = jax.random.uniform(k1, (n_obs, hidden_units), jnp.float32, -bound1, bound1)
    b1 = jax.random.uniform(k2, (hidden_units,), jnp.float32, -bound1, bound1)
    w2 = jax.random.uniform(k3, (hidden_units, 1), jnp.float32, -bound2, bound2)
    b2 = jax.random.uniform(k4, (1,), jnp.float32, -bound2, bound2)
    return w1, b1, w2, b2


if __name__ == "__main__":
    key = jax.random.PRNGKey(0)
    kx, kp = jax.random.split(key)

    batch = 16
    n_obs = 32
    hidden_units = 64

    x = jax.random.normal(kx, (batch, n_obs), jnp.float32)
    w1, b1, w2, b2 = init_params(kp, n_obs, hidden_units)

    ref = jnp.maximum(x @ w1 + b1, 0.0) @ w2 + b2

    # f32 path (native-dtype streaming; exact vs pure-JAX reference).
    v = jax.block_until_ready(ppo_critic_forward(x, w1, b1, w2, b2))
    assert v.shape == (batch, 1)
    assert jnp.allclose(v, ref, atol=1e-5, rtol=1e-5)

    # Explicit multi-tile path (exercises the tiled grid + lane-dense output).
    v_tiled = jax.block_until_ready(
        ppo_critic_forward(x, w1, b1, w2, b2, tile_batch=8))
    assert jnp.allclose(v_tiled, ref, atol=1e-5, rtol=1e-5)

    # Opt-in bf16 streaming path (f32 accumulation inside -> loose tolerance).
    v_bf16 = jax.block_until_ready(
        ppo_critic_forward(x, w1, b1, w2, b2, compute_dtype=jnp.bfloat16))
    assert jnp.allclose(v_bf16, ref, atol=5e-2, rtol=5e-2)

    print("KERNEL_OK")
</pallas_src>

<mosaic_0001>
module attributes {stable_mosaic.version = 11 : i64} {
  func.func @ppo_critic_kernel(%arg0: i32, %arg1: memref<16x32xf32, #tpu.memory_space<vmem>>, %arg2: memref<32x64xf32, #tpu.memory_space<vmem>>, %arg3: memref<2x64xf32, #tpu.memory_space<vmem>>, %arg4: memref<1xf32, #tpu.memory_space<smem>>, %arg5: memref<1x1x16xf32, #tpu.memory_space<vmem>>) attributes {dimension_semantics = [#tpu.dimension_semantics<parallel>], iteration_bounds = array<i64: 1>, scalar_prefetch = 0 : i64, scratch_operands = 0 : i64, tpu.core_type = #tpu.core_type<tc>, window_params = [{transform_indices = @transform_0, window_bounds = array<i64: 16, 32>}, {pipeline_mode = #tpu.pipeline_mode<synchronous>, transform_indices = @transform_1, window_bounds = array<i64: 32, 64>}, {pipeline_mode = #tpu.pipeline_mode<synchronous>, transform_indices = @transform_2, window_bounds = array<i64: 2, 64>}, {transform_indices = @transform_3, window_bounds = array<i64: 1>}, {transform_indices = @transform_4, window_bounds = array<i64: 1, 1, 16>}]} {
    %c0 = arith.constant 0 : index
    %c0_0 = arith.constant 0 : index
    %0 = vector.load %arg1[%c0, %c0_0] : memref<16x32xf32, #tpu.memory_space<vmem>>, vector<16x32xf32>
    %c0_1 = arith.constant 0 : index
    %c0_2 = arith.constant 0 : index
    %1 = vector.load %arg2[%c0_1, %c0_2] : memref<32x64xf32, #tpu.memory_space<vmem>>, vector<32x64xf32>
    %cst = arith.constant dense<0.000000e+00> : vector<16x64xf32>
    %2 = tpu.matmul %0, %1, %cst {dimension_numbers = #tpu.dot_dimension_numbers<[1], [0], [0], [1], [0, 0, 1, 1], [], []>} : vector<16x32xf32>, vector<32x64xf32>, vector<16x64xf32> -> vector<16x64xf32>
    %c0_3 = arith.constant 0 : index
    %c0_4 = arith.constant 0 : index
    %3 = vector.load %arg3[%c0_3, %c0_4] : memref<2x64xf32, #tpu.memory_space<vmem>>, vector<1x64xf32>
    %4 = vector.broadcast %3 : vector<1x64xf32> to vector<16x64xf32>
    %5 = arith.addf %2, %4 : vector<16x64xf32>
    %cst_5 = arith.constant 0.000000e+00 : f32
    %6 = vector.broadcast %cst_5 : f32 to vector<16x64xf32>
    %7 = arith.maximumf %5, %6 : vector<16x64xf32>
    %c1 = arith.constant 1 : index
    %c0_6 = arith.constant 0 : index
    %8 = vector.load %arg3[%c1, %c0_6] : memref<2x64xf32, #tpu.memory_space<vmem>>, vector<1x64xf32>
    %9 = vector.broadcast %8 : vector<1x64xf32> to vector<16x64xf32>
    %10 = arith.mulf %7, %9 : vector<16x64xf32>
    %cst_7 = arith.constant dense<0.000000e+00> : vector<16xf32>
    %11 = vector.multi_reduction <add>, %10, %cst_7 [1] : vector<16x64xf32> to vector<16xf32>
    %12 = vector.shape_cast %11 : vector<16xf32> to vector<16x1xf32>
    %c0_8 = arith.constant 0 : index
    %13 = memref.load %arg4[%c0_8] : memref<1xf32, #tpu.memory_space<smem>>
    %14 = vector.broadcast %13 : f32 to vector<16x1xf32>
    %15 = arith.addf %12, %14 : vector<16x1xf32>
    %16 = tpu.transpose %15, [1, 0] : vector<16x1xf32> -> vector<1x16xf32>
    %c0_9 = arith.constant 0 : index
    %c0_10 = arith.constant 0 : index
    %c0_11 = arith.constant 0 : index
    %17 = vector.load %arg5[%c0_9, %c0_10, %c0_11] : memref<1x1x16xf32, #tpu.memory_space<vmem>>, vector<1x1x16xf32>
    %18 = vector.shape_cast %17 : vector<1x1x16xf32> to vector<1x16xf32>
    %19 = vector.shape_cast %16 : vector<1x16xf32> to vector<1x1x16xf32>
    tpu.vector_store %arg5[%c0_9, %c0_10, %c0_11], %19 {strides = array<i32>} : memref<1x1x16xf32, #tpu.memory_space<vmem>>, vector<1x1x16xf32>,
    return
  }
  func.func @transform_0(%arg0: i32) -> (i32, i32) {
    %c0_i32 = arith.constant 0 : i32
    %c0_i32_0 = arith.constant 0 : i32
    return %arg0, %c0_i32 : i32, i32
  }
  func.func @transform_1(%arg0: i32) -> (i32, i32) {
    %c0_i32 = arith.constant 0 : i32
    %c0_i32_0 = arith.constant 0 : i32
    %c0_i32_1 = arith.constant 0 : i32
    return %c0_i32, %c0_i32_0 : i32, i32
  }
  func.func @transform_2(%arg0: i32) -> (i32, i32) {
    %c0_i32 = arith.constant 0 : i32
    %c0_i32_0 = arith.constant 0 : i32
    %c0_i32_1 = arith.constant 0 : i32
    return %c0_i32, %c0_i32_0 : i32, i32
  }
  func.func @transform_3(%arg0: i32) -> i32 {
    %c0_i32 = arith.constant 0 : i32
    %c0_i32_0 = arith.constant 0 : i32
    return %c0_i32 : i32
  }
  func.func @transform_4(%arg0: i32) -> (i32, i32, i32) {
    %c0_i32 = arith.constant 0 : i32
    %c0_i32_0 = arith.constant 0 : i32
    %c0_i32_1 = arith.constant 0 : i32
    return %arg0, %c0_i32, %c0_i32_0 : i32, i32, i32
  }
}

</mosaic_0001>

<bundles_post_ra>
// kernel: tpu_custom_call.1
= control target key start
LH: loop header
LB: loop body
LE: loop exit
PB: predicated region body
PF: predicated region fallthrough
CT: control target
= control target key end

     0   :  { %10 = vsyncpa [#allocation4], 0  ;;  %s392_s0 = inlined_call_operand.hbm [shape: f32[16,32], index: 0, kind: input, shape index: {}]   ;;  %s393_s1 = inlined_call_operand.hbm [shape: f32[32,64], index: 1, kind: input, shape index: {}]   ;;  %s394_s2 = inlined_call_operand.vmem [shape: f32[2,64], index: 2, kind: input, shape index: {}]   ;;  %s395_s3 = inlined_call_operand.<no memory space> [shape: f32[1], index: 3, kind: input, shape index: {}]   ;;  %s396_s4 = inlined_call_operand.hbm [shape: f32[1,1,16], index: 4, kind: output, shape index: {}]  }
   0x1   :  { %11 = vsyncpa [#allocation7], 0 }
   0x2   :  { %12 = vsyncpa [#allocation5], 0  ;;  %s317_s15 = smov [#allocation3]   ;;  %s245_s19 = scalar_lea.hbm %s392_s0, 256 }
   0x3   :  { %s18_s16 = sshll.u32 %s317_s15, 4  ;;  %p246_p0 = scmp.ne.s32.totalorder %s392_s0, %s245_s19  ;;  %s19_s16 = int_to_ptr.vmem [resolvable:$true] %s18_s16 }
   0x4   :  { %p249_p1 = scmp.lt.u32.totalorder %s245_s19, %s392_s0 }
   0x6   :  { %p251_p2 = pnand %p249_p1, %p246_p0 }
   0x8   :  { %254 = shalt.err (!%p251_p2)
}
   0x9   :  { %s255_s24 = scalar_lea.vmem %s19_s16, 256  ;;  %p260_p4 = scmp.lt.s32.totalorder %s19_s16, %s19_s16 }
   0xa   :  { %p256_p3 = scmp.ne.s32.totalorder %s19_s16, %s255_s24  ;;  %p261_p5 = scmp.lt.s32.totalorder %s255_s24, %s255_s24 }
   0xc   :  { %p262_p6 = por %p261_p5, %p260_p4 }
   0xe   :  { %p263_p7 = pnand %p262_p6, %p256_p3 }
  0x10   :  { %266 = shalt.err (!%p263_p7)
}
  0x11   :  { %s318_s25 = smov 128   ;;  %s319_s26 = smov 8  }
  0x12   :  { %24 = dma.hbm_to_vmem [thread:$0]  %s392_s0, 256, %s19_s16, [#allocation4], %s318_s25, %s318_s25, %s319_s26  }
  0x13   :  { %s320_s29 = smov [#allocation6]   ;;  %s267_s7 = scalar_lea.hbm %s393_s1, 512 }
  0x14   :  { %s30_s30 = sshll.u32 %s320_s29, 4  ;;  %p268_p8 = scmp.ne.s32.totalorder %s393_s1, %s267_s7  ;;  %s31_s30 = int_to_ptr.vmem [resolvable:$true] %s30_s30 }
  0x15   :  { %p271_p9 = scmp.lt.u32.totalorder %s267_s7, %s393_s1 }
  0x17   :  { %p273_p10 = pnand %p271_p9, %p268_p8 }
  0x19   :  { %276 = shalt.err (!%p273_p10)
}
  0x1a   :  { %s277_s12 = scalar_lea.vmem %s31_s30, 512  ;;  %p282_p12 = scmp.lt.s32.totalorder %s31_s30, %s31_s30 }
  0x1b   :  { %p278_p11 = scmp.ne.s32.totalorder %s31_s30, %s277_s12  ;;  %p283_p13 = scmp.lt.s32.totalorder %s277_s12, %s277_s12 }
  0x1d   :  { %p284_p0 = por %p283_p13, %p282_p12 }
  0x1f   :  { %p285_p1 = pnand %p284_p0, %p278_p11 }
  0x21   :  { %288 = shalt.err (!%p285_p1)
}
  0x22   :  { %36 = dma.hbm_to_vmem [thread:$0]  %s393_s1, 512, %s31_s30, [#allocation7], %s318_s25, %s318_s25, %s319_s26  }
  0x23   :  { %311 = dma.done.wait [#allocation4], 256  }
  0x24   :  { %312 = vsyncadd [#allocation4], 4294967040 }
  0x25   :  { %313 = dma.done.wait [#allocation7], 512  }
  0x26   :  { %314 = vsyncadd [#allocation7], 4294966784  ;;  %vm58_vm0 = vcmask 261120   ;;  %v49_v0 = vld [vmem:[#allocation6] sm:$0xff]  ;;  %v50_v1 = vld [vmem:[#allocation6 + $0x8] sm:$0xff]  ;;  %vm149_vm1 = vcmask 523264   ;;  %v157_v20 = vstv %s395_s3 }
  0x27   :  { %v51_v2 = vld [vmem:[#allocation6 + $0x10] sm:$0xff]  ;;  %v231_v3 = vpack.c.bf16 %v50_v1, %v49_v0  ;;  %v52_v4 = vld [vmem:[#allocation6 + $0x18] sm:$0xff]  ;;  %vm192_vm2 = vcmask 122880  }
  0x28   :  { %v47_v5 = vld [vmem:[#allocation3] sm:$0xff]  ;;  %v235_v6 = vpack.c.bf16 %v52_v4, %v51_v2  ;;  %v48_v7 = vld [vmem:[#allocation3 + $0x8] sm:$0xff] }
  0x29   :  { %228 = vmatprep.mubr.msk.f32.mxu0 %vm58_vm0, %v47_v5  ;;  %232 = vmatprep.subr.bf16.mxu0 %v231_v3  ;;  %v210_v8 = vld [vmem:[%s394_s2] ss:$0 sm:$0xff]  ;;  %v213_v13 = vld [vmem:[%s394_s2 + $0x1] ss:$0 sm:$0xff]  ;;  %s321_s2 = smov [#allocation8]  }
  0x2a   :  { %234 = vmatpush3.bf16.msra.mxu0 %v231_v3  ;;  %s200_s19 = sshll.u32 %s321_s2, 4  ;;  %s201_s19 = int_to_ptr.vmem [resolvable:$true] %s200_s19 }
  0x2b   :  { %236 = vmatprep.subr.bf16.mxu0 %v235_v6  ;;  %s289_s20 = scalar_lea.vmem %s201_s19, 16  ;;  %s293_s21 = scalar_lea.vmem %s201_s19, 32 }
  0x2c   :  { %p290_p2 = scmp.ne.s32.totalorder %s201_s19, %s289_s20  ;;  %p294_p3 = scmp.lt.s32.totalorder %s201_s19, %s201_s19 }
  0x2d   :  { %p295_p4 = scmp.lt.s32.totalorder %s293_s21, %s289_s20 }
  0x2e   :  { %238 = vmatpush3.bf16.msra.mxu0 %v235_v6 }
  0x2f   :  { %p296_p5 = por %p295_p4, %p294_p3 }
  0x31   :  { %229 = vmatmul.mubr.msk.f32.vlgmr.msra.gmra.mrb[0].mxu0 %vm58_vm0, %v48_v7  ;;  %p297_p6 = pnand %p296_p5, %p290_p2 }
 0x104   :  { %v230_v9 = vpop.f32.mrb[0].mxu0 }
 0x105   :  { %v137_v10 = vadd.f32 %v230_v9, %v210_v8  ;;  %v131_v11 = vpop.f32.mrb[1].mxu0 }
 0x106   :  { %v132_v12 = vadd.f32 %v210_v8, %v131_v11 }
 0x107   :  { %v141_v14 = vmax.f32 %v137_v10, 0.0 }
 0x108   :  { %v140_v15 = vmax.f32 %v132_v12, 0.0 }
 0x109   :  { %v148_v18 = vmul.f32 %v213_v13, %v141_v14 }
 0x10a   :  { %v147_v16 = vmul.f32 %v213_v13, %v140_v15 }
 0x10b   :  { %v153_v19 = vsel %vm149_vm1, %v148_v18, 0.0 }
 0x10c   :  { %v150_v17 = vsel %vm149_vm1, %v147_v16, 0.0 }
 0x10d   :  { %151 = vadd.xlane.f32.xlu0 %v150_v17 }
 0x111   :  { %154 = vadd.xlane.f32.xlu0 %v153_v19 }
 0x19a   :  { %v152_v21 = vpop.xlane.xlu0 %151 }
 0x19b   :  { %v158_v22 = vadd.f32 %v157_v20, %v152_v21 }
 0x19d   :  { %160 = vxpose.xlu1.b32.start [1/2] (short) (narrow) %v158_v22, 8 }
 0x19e   :  { %v155_v23 = vpop.xlane.xlu0 %154 }
 0x19f   :  { %v159_v24 = vadd.f32 %v157_v20, %v155_v23 }
 0x1a1   :  { %161 = vxpose.xlu1.b32.end [2/2] (short) (narrow) %v159_v24, 8 }
 0x21d   :  { %v176_v25 = vpop.trf.xlu1 }
 0x21e   :  { %193 = vst.msk [vmem:[#allocation8] sm:$0x1] %vm192_vm2, %v176_v25 }
 0x21f   :  { %300 = shalt.err (!%p297_p6)
}
 0x220   :  { %s301_s23 = scalar_lea.hbm %s396_s4, 16 }
 0x221   :  { %p302_p7 = scmp.ne.s32.totalorder %s396_s4, %s301_s23  ;;  %p305_p8 = scmp.lt.u32.totalorder %s301_s23, %s396_s4 }
 0x223   :  { %p307_p9 = pnand %p305_p8, %p302_p7 }
 0x225   :  { %310 = shalt.err (!%p307_p9)
}
 0x226   :  { %203 = dma.vmem_to_hbm [thread:$0]  %s201_s19, 16, %s396_s4, [#allocation5]  }
 0x227   :  { %315 = dma.done.wait [#allocation5], 16  }
 0x228   :  { %316 = vsyncadd [#allocation5], 4294967280 }
 0x229   :  { %207 = vsyncpa [#allocation4], 1 }
 0x22a   :  { %208 = vsyncpa [#allocation7], 1 }
 0x22b   :  { %209 = vsyncpa [#allocation5], 1 }

</bundles_post_ra>
